<compile_context>
chip_gen: v7x
topology: tpu7x:2x2x1
jax: 0.10.0
libtpu: 0.0.40
codegen_flags: <defaults>
</compile_context>

<pallas_src>
import numpy as np
from math import pi

import jax
import jax.numpy as jnp
from jax.experimental import pallas as pl
from jax.experimental.pallas import tpu as pltpu

# ----------------------------- configuration --------------------------------
N_QUBITS = 4
N_LAYERS = 2
BATCH = 8
DIM = 2 ** N_QUBITS          # 16  : per-sample Hilbert dimension
DPRIME = BATCH * DIM         # 128 : batch-stacked state length (one full MXU pass)
SDIM = 2 * DPRIME            # 256 : real-embedded complex state width
OUT_PAD = 128                # lane-padded output width (unmasked store)


def build_design(n_qubits, n_layers):
    """Deterministic stand-in for the searched `design` dict."""
    design = {'n_layers': n_layers, 'change_qubit': None}
    for l in range(n_layers):
        for j in range(n_qubits):
            design[f'rot{l}{j}'] = 'Rx' if (l + j) % 2 == 0 else 'Ry'
            gate = 'IsingXX' if j % 2 == 0 else 'IsingZZ'
            design[f'enta{l}{j}'] = (gate, [j, (j + 1) % n_qubits])
    return design


# --------------------- gate matrices (numpy, complex128) --------------------
def _rx(a):
    c, s = np.cos(a / 2), np.sin(a / 2)
    return np.array([[c, -1j * s], [-1j * s, c]], dtype=np.complex128)


def _ry(a):
    c, s = np.cos(a / 2), np.sin(a / 2)
    return np.array([[c, -s], [s, c]], dtype=np.complex128)


def _rz(a):
    return np.diag([np.exp(-1j * a / 2), np.exp(1j * a / 2)]).astype(np.complex128)


def _ising_xx(a):
    X = np.array([[0, 1], [1, 0]], dtype=np.complex128)
    return np.cos(a / 2) * np.eye(4, dtype=np.complex128) - 1j * np.sin(a / 2) * np.kron(X, X)


def _ising_zz(a):
    return np.diag(np.exp(-1j * (a / 2) * np.array([1.0, -1.0, -1.0, 1.0]))).astype(np.complex128)


def gate_full(g, wires, n):
    """Embed a 2^k x 2^k gate acting on `wires` (PennyLane order: wire 0 = MSB)
    into the full 2^n x 2^n unitary."""
    D = 2 ** n
    k = len(wires)
    T = np.eye(D, dtype=np.complex128).reshape([2] * n + [D])       # columns = basis states
    gt = np.asarray(g, dtype=np.complex128).reshape([2] * k + [2] * k)
    T2 = np.tensordot(gt, T, axes=(list(range(k, 2 * k)), list(wires)))
    remaining = [ax for ax in range(n) if ax not in wires]
    cur = list(wires) + remaining                                    # wire id of each leading axis
    order = [cur.index(w) for w in range(n)] + [n]
    return np.transpose(T2, order).reshape(D, D)


def layer_fixed_unitary(design, w_rot, w_enta, layer, n):
    """Weight-dependent (input-independent) part of one layer, in circuit order."""
    D = 2 ** n
    U = np.eye(D, dtype=np.complex128)
    for j in range(n):
        g = _rx(w_rot[j, layer]) if design[f'rot{layer}{j}'] == 'Rx' else _ry(w_rot[j, layer])
        U = gate_full(g, [j], n) @ U
        name, wires = design[f'enta{layer}{j}']
        if wires[0] != wires[1]:
            g2 = _ising_xx(w_enta[j, layer]) if name == 'IsingXX' else _ising_zz(w_enta[j, layer])
            U = gate_full(g2, list(wires), n) @ U
    return U


# ------------------------------- Pallas kernel -------------------------------
def quantum_kernel(w_ref, z_ref, out_ref):
    """Statevector evolution + PauliZ measurement.

    w_ref  : (N_LAYERS, SDIM, SDIM) f32 — per-layer real-embedded, batch-block-diagonal
             full layer unitary (encoding Rot gates already folded with the trainable
             RX/RY + Ising gates); laid out for row-state update  s' = s @ W_l.
    z_ref  : (DPRIME, OUT_PAD) f32 — batch-block-diagonal PauliZ sign matrix,
             lane-padded to 128 columns so the final store is unmasked.
    out_ref: (1, OUT_PAD) f32 — flattened (batch, qubit) expectations in the first
             BATCH * N_QUBITS lanes.
    """
    # |0...0> for every batch block: Re part 1 at lane b*DIM, Im part 0.
    lane = jax.lax.broadcasted_iota(jnp.int32, (1, SDIM), 1)
    s = jnp.where((lane < DPRIME) & ((lane & (DIM - 1)) == 0),
                  jnp.float32(1.0), jnp.float32(0.0))

    # One full-width 256-wide MXU matmul per layer (replaces ~13 tiny dependent dots).
    for l in range(N_LAYERS):
        s = jnp.dot(s, w_ref[l], preferred_element_type=jnp.float32)

    re = s[:, :DPRIME]                        # vreg-aligned lane slices (free)
    im = s[:, DPRIME:]
    prob = re * re + im * im                  # |psi|^2, (1, DPRIME)
    out_ref[...] = jnp.dot(prob, z_ref[...], preferred_element_type=jnp.float32)


def _full_spec(shape):
    nd = len(shape)
    return pl.BlockSpec(shape, lambda i, _nd=nd: (0,) * _nd)


# -------------------- static (weight/design-only) precompute -----------------
def precompute_static(design, w_rot, w_enta):
    n, L, D, B = N_QUBITS, design['n_layers'], DIM, BATCH
    w_rot_np = np.asarray(w_rot, np.float64)
    w_enta_np = np.asarray(w_enta, np.float64)
    u_fix = np.stack([layer_fixed_unitary(design, w_rot_np, w_enta_np, l, n)
                      for l in range(L)]).astype(np.complex64)          # (L, D, D)

    idx = np.arange(D)
    bits = np.stack([(idx >> (n - 1 - i)) & 1 for i in range(n)], axis=0).astype(np.float32)
    zsign = (1.0 - 2.0 * bits.T).astype(np.float32)                     # (D, n)
    zbig = np.zeros((DPRIME, OUT_PAD), np.float32)                      # block-diag + pad
    for b in range(B):
        zbig[b * D:(b + 1) * D, b * n:(b + 1) * n] = zsign
    return jnp.asarray(u_fix), jnp.asarray(zbig)


# ------------------------------ forward wrapper ------------------------------
def _rot_matrices(x):
    """(B, 3n) angles -> (B, n, 2, 2) complex64 Rot = RZ(omega) RY(theta) RZ(phi)."""
    B = x.shape[0]
    xr = x.astype(jnp.float32).reshape(B, N_QUBITS, 3)
    phi, theta, omega = xr[..., 0], xr[..., 1], xr[..., 2]
    c, s = jnp.cos(theta * 0.5), jnp.sin(theta * 0.5)
    a = (phi + omega) * 0.5
    d = (phi - omega) * 0.5
    r00 = jax.lax.complex(c * jnp.cos(a), -c * jnp.sin(a))
    r01 = jax.lax.complex(-s * jnp.cos(d), -s * jnp.sin(d))
    r10 = jax.lax.complex(s * jnp.cos(d), -s * jnp.sin(d))
    r11 = jax.lax.complex(c * jnp.cos(a), c * jnp.sin(a))
    row0 = jnp.stack([r00, r01], axis=-1)
    row1 = jnp.stack([r10, r11], axis=-1)
    return jnp.stack([row0, row1], axis=-2)                             # (B, n, 2, 2)


def _kron_rot(rot):
    """(B, n, 2, 2) -> (B, D, D): kron over qubits, wire 0 = MSB (PennyLane order)."""
    B = rot.shape[0]
    R = rot[:, 0]
    for q in range(1, N_QUBITS):
        dcur = R.shape[-1]
        R = (R[:, :, None, :, None] * rot[:, q][:, None, :, None, :]).reshape(B, 2 * dcur, 2 * dcur)
    return R


@jax.jit
def _forward_impl(x, u_fix, zbig):
    B = x.shape[0]
    rot = _rot_matrices(x)                            # (B, n, 2, 2) c64
    R = _kron_rot(rot)                                # (B, D, D)    c64
    # Full per-layer, per-batch gate: trainable block applied after the encoding block.
    M = jnp.einsum('lij,bjk->lbik', u_fix, R)         # (L, B, D, D) c64
    MT = jnp.swapaxes(M, -1, -2)                      # row-state convention: s' = s @ M^T
    Ar = jnp.real(MT).astype(jnp.float32)
    Ai = jnp.imag(MT).astype(jnp.float32)
    eyeB = jnp.eye(B, dtype=jnp.float32)

    def blkdiag(X):                                   # (L,B,D,D) -> (L, B*D, B*D)
        return jnp.einsum('lbij,bc->lbicj', X, eyeB).reshape(N_LAYERS, DPRIME, DPRIME)

    Abig, Cbig = blkdiag(Ar), blkdiag(Ai)
    # Real embedding of the complex row update: [re'|im'] = [re|im] @ [[A, C], [-C, A]].
    w = jnp.concatenate([jnp.concatenate([Abig, Cbig], axis=-1),
                         jnp.concatenate([-Cbig, Abig], axis=-1)], axis=-2)  # (L, SDIM, SDIM)

    out = pl.pallas_call(
        quantum_kernel,
        out_shape=jax.ShapeDtypeStruct((1, OUT_PAD), jnp.float32),
        grid=(1,),
        in_specs=[_full_spec(w.shape), _full_spec(zbig.shape)],
        out_specs=_full_spec((1, OUT_PAD)),
        compiler_params=pltpu.CompilerParams(dimension_semantics=("arbitrary",)),
    )(w, zbig)
    return out[0, :B * N_QUBITS].reshape(B, N_QUBITS)


def quantum_layer_forward(x, w_rot, w_enta, design):
    # For batch > 8, tile the batch into blocks of 8 along a leading grid axis marked
    # "parallel" (v7x dual TensorCore) instead of growing the block-diagonal matrix.
    assert x.shape[0] == BATCH and design['n_layers'] == N_LAYERS
    u_fix, zbig = precompute_static(design, w_rot, w_enta)
    return _forward_impl(x, u_fix, zbig)


# --------------------------- pure-numpy reference ----------------------------
def reference_forward(x_np, w_rot, w_enta, design):
    n, D = N_QUBITS, DIM
    B = x_np.shape[0]
    out = np.zeros((B, n), dtype=np.float64)
    for b in range(B):
        state = np.zeros(D, dtype=np.complex128)
        state[0] = 1.0
        ang = x_np[b].reshape(n, 3)
        for layer in range(design['n_layers']):
            for i in range(n):
                phi, theta, omega = ang[i]
                rot = _rz(omega) @ _ry(theta) @ _rz(phi)
                state = gate_full(rot, [i], n) @ state
            for j in range(n):
                g = _rx(w_rot[j, layer]) if design[f'rot{layer}{j}'] == 'Rx' else _ry(w_rot[j, layer])
                state = gate_full(g, [j], n) @ state
                name, wires = design[f'enta{layer}{j}']
                if wires[0] != wires[1]:
                    g2 = _ising_xx(w_enta[j, layer]) if name == 'IsingXX' else _ising_zz(w_enta[j, layer])
                    state = gate_full(g2, list(wires), n) @ state
        probs = np.abs(state) ** 2
        for i in range(n):
            signs = 1.0 - 2.0 * ((np.arange(D) >> (n - 1 - i)) & 1)
            out[b, i] = np.sum(probs * signs)
    return out


# ------------------------------------ main ------------------------------------
if __name__ == "__main__":
    key = jax.random.PRNGKey(0)
    k1, k2, k3 = jax.random.split(key, 3)

    design = build_design(N_QUBITS, N_LAYERS)

    # input features: (batch, 3 * n_qubits) angles
    x = jax.random.uniform(k1, (BATCH, 3 * N_QUBITS), jnp.float32, minval=-pi, maxval=pi)
    # q_params_rot / q_params_enta: pi * U(0,1), shape (n_qubits, n_layers)
    w_rot = pi * jax.random.uniform(k2, (N_QUBITS, N_LAYERS), jnp.float32)
    w_enta = pi * jax.random.uniform(k3, (N_QUBITS, N_LAYERS), jnp.float32)

    out = quantum_layer_forward(x, w_rot, w_enta, design)
    out = jax.block_until_ready(out)

    ref = reference_forward(np.asarray(x, np.float64), np.asarray(w_rot, np.float64),
                            np.asarray(w_enta, np.float64), design)

    assert out.shape == (BATCH, N_QUBITS) and out.dtype == jnp.float32
    np.testing.assert_allclose(np.asarray(out), ref, atol=2e-3, rtol=2e-3)
    print("KERNEL_OK")
</pallas_src>

<mosaic_0001>
module attributes {stable_mosaic.version = 11 : i64} {
  func.func @quantum_kernel(%arg0: i32, %arg1: memref<2x256x256xf32, #tpu.memory_space<vmem>>, %arg2: memref<128x128xf32, #tpu.memory_space<vmem>>, %arg3: memref<1x128xf32, #tpu.memory_space<vmem>>) attributes {dimension_semantics = [#tpu.dimension_semantics<arbitrary>], iteration_bounds = array<i64: 1>, scalar_prefetch = 0 : i64, scratch_operands = 0 : i64, tpu.core_type = #tpu.core_type<tc>, window_params = [{pipeline_mode = #tpu.pipeline_mode<synchronous>, transform_indices = @transform_0, window_bounds = array<i64: 2, 256, 256>}, {pipeline_mode = #tpu.pipeline_mode<synchronous>, transform_indices = @transform_1, window_bounds = array<i64: 128, 128>}, {pipeline_mode = #tpu.pipeline_mode<synchronous>, transform_indices = @transform_2, window_bounds = array<i64: 1, 128>}]} {
    %0 = tpu.iota {dimensions = array<i32: 1>} : vector<1x256xi32>
    %c128_i32 = arith.constant 128 : i32
    %1 = vector.broadcast %c128_i32 : i32 to vector<1x256xi32>
    %2 = arith.cmpi slt, %0, %1 : vector<1x256xi32>
    %c15_i32 = arith.constant 15 : i32
    %3 = vector.broadcast %c15_i32 : i32 to vector<1x256xi32>
    %4 = arith.andi %0, %3 : vector<1x256xi32>
    %c0_i32 = arith.constant 0 : i32
    %5 = vector.broadcast %c0_i32 : i32 to vector<1x256xi32>
    %6 = arith.cmpi eq, %4, %5 : vector<1x256xi32>
    %7 = arith.andi %2, %6 : vector<1x256xi1>
    %cst = arith.constant 1.000000e+00 : f32
    %cst_0 = arith.constant 0.000000e+00 : f32
    %8 = vector.broadcast %cst : f32 to vector<1x256xf32>
    %9 = vector.broadcast %cst_0 : f32 to vector<1x256xf32>
    %10 = arith.select %7, %8, %9 : vector<1x256xi1>, vector<1x256xf32>
    %c0 = arith.constant 0 : index
    %c0_1 = arith.constant 0 : index
    %c0_2 = arith.constant 0 : index
    %11 = vector.load %arg1[%c0, %c0_1, %c0_2] : memref<2x256x256xf32, #tpu.memory_space<vmem>>, vector<1x256x256xf32>
    %12 = vector.shape_cast %11 : vector<1x256x256xf32> to vector<256x256xf32>
    %cst_3 = arith.constant dense<0.000000e+00> : vector<1x256xf32>
    %13 = tpu.matmul %10, %12, %cst_3 {dimension_numbers = #tpu.dot_dimension_numbers<[1], [0], [0], [1], [0, 0, 1, 1], [], []>} : vector<1x256xf32>, vector<256x256xf32>, vector<1x256xf32> -> vector<1x256xf32>
    %c1 = arith.constant 1 : index
    %c0_4 = arith.constant 0 : index
    %c0_5 = arith.constant 0 : index
    %14 = vector.load %arg1[%c1, %c0_4, %c0_5] : memref<2x256x256xf32, #tpu.memory_space<vmem>>, vector<1x256x256xf32>
    %15 = vector.shape_cast %14 : vector<1x256x256xf32> to vector<256x256xf32>
    %cst_6 = arith.constant dense<0.000000e+00> : vector<1x256xf32>
    %16 = tpu.matmul %13, %15, %cst_6 {dimension_numbers = #tpu.dot_dimension_numbers<[1], [0], [0], [1], [0, 0, 1, 1], [], []>} : vector<1x256xf32>, vector<256x256xf32>, vector<1x256xf32> -> vector<1x256xf32>
    %17 = vector.extract_strided_slice %16 {offsets = [0, 0], sizes = [1, 128], strides = [1, 1]} : vector<1x256xf32> to vector<1x128xf32>
    %18 = vector.extract_strided_slice %16 {offsets = [0, 128], sizes = [1, 128], strides = [1, 1]} : vector<1x256xf32> to vector<1x128xf32>
    %19 = arith.mulf %17, %17 : vector<1x128xf32>
    %20 = arith.mulf %18, %18 : vector<1x128xf32>
    %21 = arith.addf %19, %20 : vector<1x128xf32>
    %c0_7 = arith.constant 0 : index
    %c0_8 = arith.constant 0 : index
    %22 = vector.load %arg2[%c0_7, %c0_8] : memref<128x128xf32, #tpu.memory_space<vmem>>, vector<128x128xf32>
    %cst_9 = arith.constant dense<0.000000e+00> : vector<1x128xf32>
    %23 = tpu.matmul %21, %22, %cst_9 {dimension_numbers = #tpu.dot_dimension_numbers<[1], [0], [0], [1], [0, 0, 1, 1], [], []>} : vector<1x128xf32>, vector<128x128xf32>, vector<1x128xf32> -> vector<1x128xf32>
    %c0_10 = arith.constant 0 : index
    %c0_11 = arith.constant 0 : index
    %24 = vector.load %arg3[%c0_10, %c0_11] : memref<1x128xf32, #tpu.memory_space<vmem>>, vector<1x128xf32>
    tpu.vector_store %arg3[%c0_10, %c0_11], %23 {strides = array<i32>} : memref<1x128xf32, #tpu.memory_space<vmem>>, vector<1x128xf32>,
    return
  }
  func.func @transform_0(%arg0: i32) -> (i32, i32, i32) {
    %c0_i32 = arith.constant 0 : i32
    %c0_i32_0 = arith.constant 0 : i32
    %c0_i32_1 = arith.constant 0 : i32
    %c0_i32_2 = arith.constant 0 : i32
    return %c0_i32, %c0_i32_0, %c0_i32_1 : i32, i32, i32
  }
  func.func @transform_1(%arg0: i32) -> (i32, i32) {
    %c0_i32 = arith.constant 0 : i32
    %c0_i32_0 = arith.constant 0 : i32
    %c0_i32_1 = arith.constant 0 : i32
    return %c0_i32, %c0_i32_0 : i32, i32
  }
  func.func @transform_2(%arg0: i32) -> (i32, i32) {
    %c0_i32 = arith.constant 0 : i32
    %c0_i32_0 = arith.constant 0 : i32
    %c0_i32_1 = arith.constant 0 : i32
    return %c0_i32, %c0_i32_0 : i32, i32
  }
}

</mosaic_0001>

<bundles_post_ra>
// kernel: custom-call.1
= control target key start
LH: loop header
LB: loop body
LE: loop exit
PB: predicated region body
PF: predicated region fallthrough
CT: control target
= control target key end

     0   :  { %s59_s0 = inlined_call_operand.hbm [shape: c64[2,16,16], index: 0, kind: input, shape index: {}]   ;;  %s60_s1 = inlined_call_operand.vmem [shape: f32[2,16,16], index: 1, kind: output, shape index: {}]  }
   0x1   :  { %s2_s8 = scalar_lea.hbm %s59_s0, 512 }
   0x2   :  { %3 = vsyncpa [#allocation0], 0  ;;  %s4_s11 = sshll.u32 %s60_s1, 4  ;;  %s34_s14 = scalar_lea.hbm %s59_s0, 1024  ;;  %s5_s11 = int_to_ptr.vmem [resolvable:$true] %s4_s11 }
   0x3   :  { %p11_p0 = scmp.ne.s32.totalorder %s2_s8, %s34_s14  ;;  %p13_p1 = scmp.lt.u32.totalorder %s2_s8, %s59_s0 }
   0x4   :  { %p14_p2 = scmp.lt.u32.totalorder %s34_s14, %s34_s14  ;;  %p16_p4 = scmp.lt.u32.totalorder %s34_s14, %s2_s8 }
   0x6   :  { %p15_p3 = por %p14_p2, %p13_p1 }
   0x8   :  { %p17_p5 = por %p16_p4, %p15_p3 }
   0xa   :  { %p18_p6 = pnand %p17_p5, %p11_p0 }
   0xc   :  { %21 = shalt.err (!%p18_p6)  }
   0xd   :  { %s22_s17 = scalar_lea.vmem %s5_s11, 512  ;;  %p27_p8 = scmp.lt.s32.totalorder %s5_s11, %s5_s11 }
   0xe   :  { %p23_p7 = scmp.ne.s32.totalorder %s5_s11, %s22_s17  ;;  %p28_p9 = scmp.lt.s32.totalorder %s22_s17, %s22_s17 }
  0x10   :  { %p29_p10 = por %p28_p9, %p27_p8 }
  0x12   :  { %p30_p11 = pnand %p29_p10, %p23_p7 }
  0x14   :  { %33 = shalt.err (!%p30_p11)  }
  0x15   :  { %7 = dma.hbm_to_vmem [thread:$0]  %s2_s8, 512, %s5_s11, [#allocation0] }
  0x16   :  { %35 = dma.done.wait [#allocation0], 512  }
  0x17   :  { %36 = vsyncadd [#allocation0], 4294966784 }
  0x18   :  { %9 = vsyncpa [#allocation0], 1 }

// kernel: custom-call
= control target key start
LH: loop header
LB: loop body
LE: loop exit
PB: predicated region body
PF: predicated region fallthrough
CT: control target
= control target key end

     0   :  { %2 = vsyncpa [#allocation0], 0  ;;  %s61_s0 = inlined_call_operand.hbm [shape: c64[2,16,16], index: 0, kind: input, shape index: {}]   ;;  %s62_s1 = inlined_call_operand.vmem [shape: f32[2,16,16], index: 1, kind: output, shape index: {}]  }
   0x1   :  { %s3_s8 = sshll.u32 %s62_s1, 4  ;;  %s9_s11 = scalar_lea.hbm %s61_s0, 512  ;;  %s4_s8 = int_to_ptr.vmem [resolvable:$true] %s3_s8 }
   0x2   :  { %p10_p0 = scmp.ne.s32.totalorder %s61_s0, %s9_s11  ;;  %s11_s16 = scalar_lea.hbm %s61_s0, 1024 }
   0x3   :  { %p12_p1 = scmp.lt.u32.totalorder %s11_s16, %s9_s11  ;;  %p13_p2 = scmp.lt.u32.totalorder %s9_s11, %s61_s0 }
   0x5   :  { %p14_p3 = por %p13_p2, %p12_p1 }
   0x7   :  { %p15_p4 = pnand %p14_p3, %p10_p0 }
   0x9   :  { %18 = shalt.err (!%p15_p4)  }
   0xa   :  { %s19_s1 = scalar_lea.vmem %s4_s8, 512  ;;  %p24_p6 = scmp.lt.s32.totalorder %s4_s8, %s4_s8 }
   0xb   :  { %p20_p5 = scmp.ne.s32.totalorder %s4_s8, %s19_s1  ;;  %p25_p7 = scmp.lt.s32.totalorder %s19_s1, %s19_s1 }
   0xd   :  { %p26_p8 = por %p25_p7, %p24_p6 }
   0xf   :  { %p27_p9 = pnand %p26_p8, %p20_p5 }
  0x11   :  { %30 = shalt.err (!%p27_p9)  }
  0x12   :  { %6 = dma.hbm_to_vmem [thread:$0]  %s61_s0, 512, %s4_s8, [#allocation0] }
  0x13   :  { %31 = dma.done.wait [#allocation0], 512  }
  0x14   :  { %32 = vsyncadd [#allocation0], 4294966784 }
  0x15   :  { %8 = vsyncpa [#allocation0], 1 }

// kernel: neg.9
= control target key start
LH: loop header
LB: loop body
LE: loop exit
PB: predicated region body
PF: predicated region fallthrough
CT: control target
= control target key end

     0   :  { %s520_s0 = inlined_call_operand.vmem [shape: f32[2,128,128], index: 0, kind: input, shape index: {}]   ;;  %s521_s1 = inlined_call_operand.vmem [shape: f32[2,128,128], index: 1, kind: output, shape index: {}]  }
   0x1   :  { %v2_v0 = vld [vmem:[%s520_s0] sm:$0xff]  ;;  %v258_v2 = vld [vmem:[%s520_s0 + $0x8] sm:$0xff]  ;;  %v262_v7 = vld [vmem:[%s520_s0 + $0x10] sm:$0xff] }
   0x2   :  { %v256_v1 = vld [vmem:[%s520_s0 + $0x80] sm:$0xff]  ;;  %v5_v3 = vxor.u32 2147483648, %v2_v0  ;;  %v20_v5 = vxor.u32 2147483648, %v258_v2  ;;  %v260_v6 = vld [vmem:[%s520_s0 + $0x88] sm:$0xff]  ;;  %v264_v8 = vld [vmem:[%s520_s0 + $0x90] sm:$0xff]  ;;  %v36_v10 = vxor.u32 2147483648, %v262_v7 }
   0x3   :  { %v12_v4 = vxor.u32 2147483648, %v256_v1  ;;  %v28_v9 = vxor.u32 2147483648, %v260_v6  ;;  %v44_v11 = vxor.u32 2147483648, %v264_v8  ;;  %v266_v12 = vld [vmem:[%s520_s0 + $0x18] sm:$0xff]  ;;  %v270_v14 = vld [vmem:[%s520_s0 + $0x20] sm:$0xff]  ;;  %v274_v19 = vld [vmem:[%s520_s0 + $0x28] sm:$0xff] }
   0x4   :  { %v268_v13 = vld [vmem:[%s520_s0 + $0x98] sm:$0xff]  ;;  %7 = vst [vmem:[%s521_s1] sm:$0xff] %v5_v3  ;;  %259 = vst [vmem:[%s521_s1 + $0x8] sm:$0xff] %v20_v5  ;;  %v52_v15 = vxor.u32 2147483648, %v266_v12  ;;  %v68_v17 = vxor.u32 2147483648, %v270_v14  ;;  %v272_v18 = vld [vmem:[%s520_s0 + $0xa0] sm:$0xff]  ;;  %v84_v22 = vxor.u32 2147483648, %v274_v19 }
   0x5   :  { %257 = vst [vmem:[%s521_s1 + $0x80] sm:$0xff] %v12_v4  ;;  %v60_v16 = vxor.u32 2147483648, %v268_v13  ;;  %v276_v20 = vld [vmem:[%s520_s0 + $0xa8] sm:$0xff]  ;;  %261 = vst [vmem:[%s521_s1 + $0x88] sm:$0xff] %v28_v9  ;;  %v76_v21 = vxor.u32 2147483648, %v272_v18  ;;  %v278_v24 = vld [vmem:[%s520_s0 + $0x30] sm:$0xff] }
   0x6   :  { %263 = vst [vmem:[%s521_s1 + $0x10] sm:$0xff] %v36_v10  ;;  %265 = vst [vmem:[%s521_s1 + $0x90] sm:$0xff] %v44_v11  ;;  %v92_v23 = vxor.u32 2147483648, %v276_v20  ;;  %v280_v25 = vld [vmem:[%s520_s0 + $0xb0] sm:$0xff]  ;;  %v282_v26 = vld [vmem:[%s520_s0 + $0x38] sm:$0xff]  ;;  %v100_v27 = vxor.u32 2147483648, %v278_v24 }
   0x7   :  { %267 = vst [vmem:[%s521_s1 + $0x18] sm:$0xff] %v52_v15  ;;  %269 = vst [vmem:[%s521_s1 + $0x98] sm:$0xff] %v60_v16  ;;  %v108_v28 = vxor.u32 2147483648, %v280_v25  ;;  %v116_v29 = vxor.u32 2147483648, %v282_v26  ;;  %v284_v30 = vld [vmem:[%s520_s0 + $0xb8] sm:$0xff]  ;;  %v286_v31 = vld [vmem:[%s520_s0 + $0x40] sm:$0xff] }
   0x8   :  { %271 = vst [vmem:[%s521_s1 + $0x20] sm:$0xff] %v68_v17  ;;  %v288_v32 = vld [vmem:[%s520_s0 + $0xc0] sm:$0xff]  ;;  %273 = vst [vmem:[%s521_s1 + $0xa0] sm:$0xff] %v76_v21  ;;  %v124_v33 = vxor.u32 2147483648, %v284_v30  ;;  %v132_v34 = vxor.u32 2147483648, %v286_v31  ;;  %v290_v36 = vld [vmem:[%s520_s0 + $0x48] sm:$0xff] }
   0x9   :  { %275 = vst [vmem:[%s521_s1 + $0x28] sm:$0xff] %v84_v22  ;;  %277 = vst [vmem:[%s521_s1 + $0xa8] sm:$0xff] %v92_v23  ;;  %v140_v35 = vxor.u32 2147483648, %v288_v32  ;;  %v292_v37 = vld [vmem:[%s520_s0 + $0xc8] sm:$0xff]  ;;  %v294_v38 = vld [vmem:[%s520_s0 + $0x50] sm:$0xff]  ;;  %v148_v39 = vxor.u32 2147483648, %v290_v36 }
   0xa   :  { %279 = vst [vmem:[%s521_s1 + $0x30] sm:$0xff] %v100_v27  ;;  %281 = vst [vmem:[%s521_s1 + $0xb0] sm:$0xff] %v108_v28  ;;  %v156_v40 = vxor.u32 2147483648, %v292_v37  ;;  %v164_v41 = vxor.u32 2147483648, %v294_v38  ;;  %v296_v42 = vld [vmem:[%s520_s0 + $0xd0] sm:$0xff]  ;;  %v298_v43 = vld [vmem:[%s520_s0 + $0x58] sm:$0xff] }
   0xb   :  { %283 = vst [vmem:[%s521_s1 + $0x38] sm:$0xff] %v116_v29  ;;  %v300_v44 = vld [vmem:[%s520_s0 + $0xd8] sm:$0xff]  ;;  %285 = vst [vmem:[%s521_s1 + $0xb8] sm:$0xff] %v124_v33  ;;  %v172_v45 = vxor.u32 2147483648, %v296_v42  ;;  %v180_v46 = vxor.u32 2147483648, %v298_v43  ;;  %v302_v48 = vld [vmem:[%s520_s0 + $0x60] sm:$0xff] }
   0xc   :  { %287 = vst [vmem:[%s521_s1 + $0x40] sm:$0xff] %v132_v34  ;;  %289 = vst [vmem:[%s521_s1 + $0xc0] sm:$0xff] %v140_v35  ;;  %v188_v47 = vxor.u32 2147483648, %v300_v44  ;;  %v304_v49 = vld [vmem:[%s520_s0 + $0xe0] sm:$0xff]  ;;  %v306_v50 = vld [vmem:[%s520_s0 + $0x68] sm:$0xff]  ;;  %v196_v51 = vxor.u32 2147483648, %v302_v48 }
   0xd   :  { %291 = vst [vmem:[%s521_s1 + $0x48] sm:$0xff] %v148_v39  ;;  %293 = vst [vmem:[%s521_s1 + $0xc8] sm:$0xff] %v156_v40  ;;  %v204_v52 = vxor.u32 2147483648, %v304_v49  ;;  %v212_v53 = vxor.u32 2147483648, %v306_v50  ;;  %v308_v54 = vld [vmem:[%s520_s0 + $0xe8] sm:$0xff]  ;;  %v310_v55 = vld [vmem:[%s520_s0 + $0x70] sm:$0xff] }
   0xe   :  { %295 = vst [vmem:[%s521_s1 + $0x50] sm:$0xff] %v164_v41  ;;  %v312_v56 = vld [vmem:[%s520_s0 + $0xf0] sm:$0xff]  ;;  %297 = vst [vmem:[%s521_s1 + $0xd0] sm:$0xff] %v172_v45  ;;  %v220_v57 = vxor.u32 2147483648, %v308_v54  ;;  %v228_v58 = vxor.u32 2147483648, %v310_v55  ;;  %v314_v60 = vld [vmem:[%s520_s0 + $0x78] sm:$0xff] }
   0xf   :  { %299 = vst [vmem:[%s521_s1 + $0x58] sm:$0xff] %v180_v46  ;;  %301 = vst [vmem:[%s521_s1 + $0xd8] sm:$0xff] %v188_v47  ;;  %v236_v59 = vxor.u32 2147483648, %v312_v56  ;;  %v316_v61 = vld [vmem:[%s520_s0 + $0xf8] sm:$0xff]  ;;  %v244_v62 = vxor.u32 2147483648, %v314_v60 }
  0x10   :  { %303 = vst [vmem:[%s521_s1 + $0x60] sm:$0xff] %v196_v51  ;;  %305 = vst [vmem:[%s521_s1 + $0xe0] sm:$0xff] %v204_v52  ;;  %v252_v63 = vxor.u32 2147483648, %v316_v61 }
  0x11   :  { %307 = vst [vmem:[%s521_s1 + $0x68] sm:$0xff] %v212_v53  ;;  %309 = vst [vmem:[%s521_s1 + $0xe8] sm:$0xff] %v220_v57 }
  0x12   :  { %311 = vst [vmem:[%s521_s1 + $0x70] sm:$0xff] %v228_v58  ;;  %313 = vst [vmem:[%s521_s1 + $0xf0] sm:$0xff] %v236_v59 }
  0x13   :  { %315 = vst [vmem:[%s521_s1 + $0x78] sm:$0xff] %v244_v62  ;;  %317 = vst [vmem:[%s521_s1 + $0xf8] sm:$0xff] %v252_v63 }

// kernel: squeeze.15
= control target key start
LH: loop header
LB: loop body
LE: loop exit
PB: predicated region body
PF: predicated region fallthrough
CT: control target
= control target key end

     0   :  { %s66_s8 = smov 116   ;;  %vm7_vm0 = vcmask 31744   ;;  %s67_s11 = smov 120   ;;  %s117_s0 = inlined_call_operand.vmem [shape: f32[32], index: 0, kind: input, shape index: {}]   ;;  %s118_s1 = inlined_call_operand.vmem [shape: f32[8,4], index: 1, kind: output, shape index: {}]  }
   0x1   :  { %v4_v0 = vld [vmem:[%s117_s0] sm:$0x1]  ;;  %s65_s0 = smov 124   ;;  %s68_s12 = smov 112  }
   0x2   :  { %5 = vst [vmem:[#allocation0] sm:$0x1] %v4_v0  ;;  %s69_s13 = smov 108   ;;  %s70_s14 = smov 104  }
   0x3   :  { %s71_s15 = smov 100  }
   0x9   :  { %v9_v1 = vld [vmem:[#allocation0] sm:$0x1]  }
   0xa   :  { %v21_v2 = vld [vmem:[#allocation0] sm:$0x1]   ;;  %10 = vrot.lane.b32.xlu0 %v9_v1, %s65_s0 }
   0xb   :  { %22 = vrot.lane.b32.xlu1 %v21_v2, %s66_s8  ;;  %v15_v3 = vld [vmem:[#allocation0] sm:$0x1]  }
   0xc   :  { %v27_v4 = vld [vmem:[#allocation0] sm:$0x1]  }
   0xd   :  { %v6_v5 = vld [vmem:[#allocation0] sm:$0x1]  }
   0xe   :  { %8 = vst.msk [vmem:[%s118_s1] sm:$0x1] %vm7_vm0, %v6_v5   ;;  %16 = vrot.lane.b32.xlu0 %v15_v3, %s67_s11  ;;  %v33_v6 = vld [vmem:[#allocation0] sm:$0x1]  }
   0xf   :  { %28 = vrot.lane.b32.xlu1 %v27_v4, %s68_s12  ;;  %v39_v7 = vld [vmem:[#allocation0] sm:$0x1]  }
  0x10   :  { %v45_v8 = vld [vmem:[#allocation0] sm:$0x1]  }
  0x12   :  { %34 = vrot.lane.b32.xlu0 %v33_v6, %s69_s13 }
  0x13   :  { %40 = vrot.lane.b32.xlu1 %v39_v7, %s70_s14 }
  0x16   :  { %46 = vrot.lane.b32.xlu0 %v45_v8, %s71_s15 }
  0x7c   :  { %v11_v9 = vpop.permute.xlu0 %10  }
  0x7d   :  { %v23_v10 = vpop.permute.xlu1 %22   ;;  %51 = vst.msk [vmem:[%s118_s1 + $0x1] sm:$0x1] %vm7_vm0, %v11_v9  }
  0x7e   :  { %53 = vst.msk [vmem:[%s118_s1 + $0x3] sm:$0x1] %vm7_vm0, %v23_v10  }
  0x80   :  { %v17_v11 = vpop.permute.xlu0 %16  }
  0x81   :  { %v29_v12 = vpop.permute.xlu1 %28   ;;  %52 = vst.msk [vmem:[%s118_s1 + $0x2] sm:$0x1] %vm7_vm0, %v17_v11  }
  0x82   :  { %54 = vst.msk [vmem:[%s118_s1 + $0x4] sm:$0x1] %vm7_vm0, %v29_v12  }
  0x84   :  { %v35_v13 = vpop.permute.xlu0 %34  }
  0x85   :  { %v41_v14 = vpop.permute.xlu1 %40   ;;  %55 = vst.msk [vmem:[%s118_s1 + $0x5] sm:$0x1] %vm7_vm0, %v35_v13  }
  0x86   :  { %56 = vst.msk [vmem:[%s118_s1 + $0x6] sm:$0x1] %vm7_vm0, %v41_v14  }
  0x88   :  { %v47_v15 = vpop.permute.xlu0 %46  }
  0x89   :  { %57 = vst.msk [vmem:[%s118_s1 + $0x7] sm:$0x1] %vm7_vm0, %v47_v15  }

// kernel: _forward_impl.1
= control target key start
LH: loop header
LB: loop body
LE: loop exit
PB: predicated region body
PF: predicated region fallthrough
CT: control target
= control target key end

     0   :  { %v662_v3 = vmov 0.0   ;;  %vm665_vm1 = vmmov 0   ;;  %s1118_s0 = inlined_call_operand.vmem [shape: f32[2,256,256], index: 0, kind: input, shape index: {}]   ;;  %s1119_s1 = inlined_call_operand.vmem [shape: f32[128,128], index: 1, kind: input, shape index: {}]   ;;  %s1120_s2 = inlined_call_operand.vmem [shape: f32[1,128], index: 2, kind: output, shape index: {}]  }
   0x1   :  { %v25_v0 = vld [vmem:[%s1118_s0 + $0x8] sm:$0xff]  ;;  %v27_v1 = vld [vmem:[%s1118_s0 + $0x18] sm:$0xff]  ;;  %v24_v2 = vld [vmem:[%s1118_s0] sm:$0xff]  ;;  %152 = vmatprep.mubr.f32.mxu0 %v662_v3 }
   0x2   :  { %v506_v4 = vpack.c.bf16 %v27_v1, %v25_v0  ;;  %v26_v5 = vld [vmem:[%s1118_s0 + $0x10] sm:$0xff]  ;;  %v29_v6 = vld [vmem:[%s1118_s0 + $0x28] sm:$0xff]  ;;  %v31_v7 = vld [vmem:[%s1118_s0 + $0x38] sm:$0xff] }
   0x3   :  { %v508_v8 = vpack.c.bf16 %v26_v5, %v24_v2  ;;  %v510_v9 = vpack.c.bf16 %v31_v7, %v29_v6  ;;  %v28_v10 = vld [vmem:[%s1118_s0 + $0x20] sm:$0xff]  ;;  %v30_v11 = vld [vmem:[%s1118_s0 + $0x30] sm:$0xff]  ;;  %v33_v12 = vld [vmem:[%s1118_s0 + $0x48] sm:$0xff] }
   0x4   :  { %507 = vmatprep.subr.bf16.mxu0 %v506_v4  ;;  %v35_v13 = vld [vmem:[%s1118_s0 + $0x58] sm:$0xff]  ;;  %v512_v14 = vpack.c.bf16 %v30_v11, %v28_v10  ;;  %v32_v16 = vld [vmem:[%s1118_s0 + $0x40] sm:$0xff]  ;;  %v34_v17 = vld [vmem:[%s1118_s0 + $0x50] sm:$0xff] }
   0x5   :  { %509 = vmatpush1.bf16.msra.mxu0 %v508_v8  ;;  %v514_v15 = vpack.c.bf16 %v35_v13, %v33_v12  ;;  %v37_v18 = vld [vmem:[%s1118_s0 + $0x68] sm:$0xff]  ;;  %v39_v19 = vld [vmem:[%s1118_s0 + $0x78] sm:$0xff]  ;;  %v516_v20 = vpack.c.bf16 %v34_v17, %v32_v16  ;;  %v36_v22 = vld [vmem:[%s1118_s0 + $0x60] sm:$0xff] }
   0x6   :  { %511 = vmatprep.subr.bf16.mxu0 %v510_v9  ;;  %v518_v21 = vpack.c.bf16 %v39_v19, %v37_v18  ;;  %v38_v23 = vld [vmem:[%s1118_s0 + $0x70] sm:$0xff]  ;;  %v41_v24 = vld [vmem:[%s1118_s0 + $0x88] sm:$0xff]  ;;  %v43_v25 = vld [vmem:[%s1118_s0 + $0x98] sm:$0xff] }
   0x7   :  { %v520_v26 = vpack.c.bf16 %v38_v23, %v36_v22  ;;  %v522_v27 = vpack.c.bf16 %v43_v25, %v41_v24  ;;  %v40_v28 = vld [vmem:[%s1118_s0 + $0x80] sm:$0xff]  ;;  %v42_v29 = vld [vmem:[%s1118_s0 + $0x90] sm:$0xff]  ;;  %v45_v30 = vld [vmem:[%s1118_s0 + $0xa8] sm:$0xff] }
   0x8   :  { %v47_v31 = vld [vmem:[%s1118_s0 + $0xb8] sm:$0xff]  ;;  %v524_v32 = vpack.c.bf16 %v42_v29, %v40_v28  ;;  %v44_v34 = vld [vmem:[%s1118_s0 + $0xa0] sm:$0xff]  ;;  %v46_v35 = vld [vmem:[%s1118_s0 + $0xb0] sm:$0xff] }
   0x9   :  { %513 = vmatpush1.bf16.msra.mxu0 %v512_v14  ;;  %v526_v33 = vpack.c.bf16 %v47_v31, %v45_v30  ;;  %v49_v36 = vld [vmem:[%s1118_s0 + $0xc8] sm:$0xff]  ;;  %v51_v37 = vld [vmem:[%s1118_s0 + $0xd8] sm:$0xff]  ;;  %v528_v38 = vpack.c.bf16 %v46_v35, %v44_v34  ;;  %v48_v39 = vld [vmem:[%s1118_s0 + $0xc0] sm:$0xff] }
   0xa   :  { %515 = vmatprep.subr.bf16.mxu0 %v514_v15  ;;  %v50_v40 = vld [vmem:[%s1118_s0 + $0xd0] sm:$0xff]  ;;  %v53_v41 = vld [vmem:[%s1118_s0 + $0xe8] sm:$0xff]  ;;  %v530_v42 = vpack.c.bf16 %v51_v37, %v49_v36  ;;  %v55_v43 = vld [vmem:[%s1118_s0 + $0xf8] sm:$0xff] }
   0xb   :  { %v391_v44 = vld [vmem:[%s1118_s0 + $0x208] sm:$0xff]  ;;  %v393_v45 = vld [vmem:[%s1118_s0 + $0x218] sm:$0xff]  ;;  %v390_v47 = vld [vmem:[%s1118_s0 + $0x200] sm:$0xff]  ;;  %v532_v54 = vpack.c.bf16 %v50_v40, %v48_v39  ;;  %v534_v58 = vpack.c.bf16 %v55_v43, %v53_v41 }
   0xc   :  { %v570_v46 = vpack.c.bf16 %v393_v45, %v391_v44  ;;  %v392_v48 = vld [vmem:[%s1118_s0 + $0x210] sm:$0xff]  ;;  %v395_v49 = vld [vmem:[%s1118_s0 + $0x228] sm:$0xff]  ;;  %v397_v51 = vld [vmem:[%s1118_s0 + $0x238] sm:$0xff] }
   0xd   :  { %517 = vmatpush1.bf16.msra.mxu0 %v516_v20  ;;  %v572_v50 = vpack.c.bf16 %v392_v48, %v390_v47  ;;  %v394_v52 = vld [vmem:[%s1118_s0 + $0x220] sm:$0xff]  ;;  %v396_v53 = vld [vmem:[%s1118_s0 + $0x230] sm:$0xff]  ;;  %v574_v55 = vpack.c.bf16 %v397_v51, %v395_v49  ;;  %v399_v56 = vld [vmem:[%s1118_s0 + $0x248] sm:$0xff] }
   0xe   :  { %519 = vmatprep.subr.bf16.mxu0 %v518_v21  ;;  %571 = vmatprep.subr.bf16.mxu1 %v570_v46  ;;  %v401_v57 = vld [vmem:[%s1118_s0 + $0x258] sm:$0xff]  ;;  %v52_v59 = vld [vmem:[%s1118_s0 + $0xe0] sm:$0xff]  ;;  %v54_v60 = vld [vmem:[%s1118_s0 + $0xf0] sm:$0xff]  ;;  %v576_v62 = vpack.c.bf16 %v396_v53, %v394_v52 }
   0xf   :  { %v57_v61 = vld [vmem:[%s1118_s0 + $0x108] sm:$0xff]  ;;  %573 = vmatpush1.bf16.msra.mxu1 %v572_v50  ;;  %v59_v63 = vld [vmem:[%s1118_s0 + $0x118] sm:$0xff]  ;;  %v578_v0 = vpack.c.bf16 %v401_v57, %v399_v56  ;;  %v398_v1 = vld [vmem:[%s1118_s0 + $0x240] sm:$0xff]  ;;  %v536_v6 = vpack.c.bf16 %v54_v60, %v52_v59 }
  0x10   :  { %575 = vmatprep.subr.bf16.mxu1 %v574_v55  ;;  %v400_v2 = vld [vmem:[%s1118_s0 + $0x250] sm:$0xff]  ;;  %v403_v4 = vld [vmem:[%s1118_s0 + $0x268] sm:$0xff]  ;;  %v405_v5 = vld [vmem:[%s1118_s0 + $0x278] sm:$0xff]  ;;  %v538_v7 = vpack.c.bf16 %v59_v63, %v57_v61 }
  0x11   :  { %521 = vmatpush1.bf16.msra.mxu0 %v520_v26  ;;  %v56_v8 = vld [vmem:[%s1118_s0 + $0x100] sm:$0xff]  ;;  %v58_v9 = vld [vmem:[%s1118_s0 + $0x110] sm:$0xff]  ;;  %v61_v10 = vld [vmem:[%s1118_s0 + $0x128] sm:$0xff]  ;;  %v580_v11 = vpack.c.bf16 %v400_v2, %v398_v1  ;;  %v582_v13 = vpack.c.bf16 %v405_v5, %v403_v4 }
  0x12   :  { %523 = vmatprep.subr.bf16.mxu0 %v522_v27  ;;  %v63_v12 = vld [vmem:[%s1118_s0 + $0x138] sm:$0xff]  ;;  %v402_v14 = vld [vmem:[%s1118_s0 + $0x260] sm:$0xff]  ;;  %v404_v15 = vld [vmem:[%s1118_s0 + $0x270] sm:$0xff]  ;;  %v540_v18 = vpack.c.bf16 %v58_v9, %v56_v8 }
  0x13   :  { %577 = vmatpush1.bf16.msra.mxu1 %v576_v62  ;;  %v407_v16 = vld [vmem:[%s1118_s0 + $0x288] sm:$0xff]  ;;  %v409_v17 = vld [vmem:[%s1118_s0 + $0x298] sm:$0xff]  ;;  %v542_v19 = vpack.c.bf16 %v63_v12, %v61_v10  ;;  %v60_v20 = vld [vmem:[%s1118_s0 + $0x120] sm:$0xff]  ;;  %v584_v23 = vpack.c.bf16 %v404_v15, %v402_v14 }
  0x14   :  { %579 = vmatprep.subr.bf16.mxu1 %v578_v0  ;;  %v62_v21 = vld [vmem:[%s1118_s0 + $0x130] sm:$0xff]  ;;  %v65_v22 = vld [vmem:[%s1118_s0 + $0x148] sm:$0xff]  ;;  %v67_v24 = vld [vmem:[%s1118_s0 + $0x158] sm:$0xff]  ;;  %v586_v25 = vpack.c.bf16 %v409_v17, %v407_v16  ;;  %v11_v16 = vlaneseq }
  0x15   :  { %525 = vmatpush1.bf16.msra.mxu0 %v524_v32  ;;  %v406_v26 = vld [vmem:[%s1118_s0 + $0x280] sm:$0xff]  ;;  %v408_v27 = vld [vmem:[%s1118_s0 + $0x290] sm:$0xff]  ;;  %v411_v28 = vld [vmem:[%s1118_s0 + $0x2a8] sm:$0xff]  ;;  %v544_v30 = vpack.c.bf16 %v62_v21, %v60_v20  ;;  %v546_v31 = vpack.c.bf16 %v67_v24, %v65_v22 }
  0x16   :  { %527 = vmatprep.subr.bf16.mxu0 %v526_v33  ;;  %v413_v29 = vld [vmem:[%s1118_s0 + $0x2b8] sm:$0xff]  ;;  %v64_v32 = vld [vmem:[%s1118_s0 + $0x140] sm:$0xff]  ;;  %v66_v33 = vld [vmem:[%s1118_s0 + $0x150] sm:$0xff]  ;;  %v588_v35 = vpack.c.bf16 %v408_v27, %v406_v26 }
  0x17   :  { %581 = vmatpush1.bf16.msra.mxu1 %v580_v11  ;;  %v69_v34 = vld [vmem:[%s1118_s0 + $0x168] sm:$0xff]  ;;  %v71_v36 = vld [vmem:[%s1118_s0 + $0x178] sm:$0xff]  ;;  %v590_v37 = vpack.c.bf16 %v413_v29, %v411_v28  ;;  %v412_v39 = vld [vmem:[%s1118_s0 + $0x2b0] sm:$0xff]  ;;  %v12_v29 = vand.u32 127, %v11_v16 }
  0x18   :  { %583 = vmatprep.subr.bf16.mxu1 %v582_v13  ;;  %v415_v40 = vld [vmem:[%s1118_s0 + $0x2c8] sm:$0xff]  ;;  %v417_v41 = vld [vmem:[%s1118_s0 + $0x2d8] sm:$0xff]  ;;  %v550_v43 = vpack.c.bf16 %v71_v36, %v69_v34  ;;  %v68_v44 = vld [vmem:[%s1118_s0 + $0x160] sm:$0xff] }
  0x19   :  { %529 = vmatpush1.bf16.msra.mxu0 %v528_v38  ;;  %v410_v38 = vld [vmem:[%s1118_s0 + $0x2a0] sm:$0xff]  ;;  %v70_v45 = vld [vmem:[%s1118_s0 + $0x170] sm:$0xff]  ;;  %v73_v46 = vld [vmem:[%s1118_s0 + $0x188] sm:$0xff]  ;;  %v594_v49 = vpack.c.bf16 %v417_v41, %v415_v40  ;;  %v16_v40 = vand.u32 15, %v12_v29 }
  0x1a   :  { %531 = vmatprep.subr.bf16.mxu0 %v530_v42  ;;  %v548_v42 = vpack.c.bf16 %v66_v33, %v64_v32  ;;  %v592_v47 = vpack.c.bf16 %v412_v39, %v410_v38  ;;  %v75_v48 = vld [vmem:[%s1118_s0 + $0x198] sm:$0xff]  ;;  %v414_v50 = vld [vmem:[%s1118_s0 + $0x2c0] sm:$0xff]  ;;  %v416_v51 = vld [vmem:[%s1118_s0 + $0x2d0] sm:$0xff] }
  0x1b   :  { %585 = vmatpush1.bf16.msra.mxu1 %v584_v23  ;;  %v419_v52 = vld [vmem:[%s1118_s0 + $0x2e8] sm:$0xff]  ;;  %v421_v53 = vld [vmem:[%s1118_s0 + $0x2f8] sm:$0xff]  ;;  %v554_v55 = vpack.c.bf16 %v75_v48, %v73_v46  ;;  %v72_v56 = vld [vmem:[%s1118_s0 + $0x180] sm:$0xff]  ;;  %v596_v59 = vpack.c.bf16 %v416_v51, %v414_v50  ;;  %vm18_vm0 = vcmp.eq.s32.totalorder %v16_v40, 0  ;;  %v663_v51 = vmov 1.0  }
  0x1c   :  { %587 = vmatprep.subr.bf16.mxu1 %v586_v25  ;;  %v74_v57 = vld [vmem:[%s1118_s0 + $0x190] sm:$0xff]  ;;  %v79_v60 = vld [vmem:[%s1118_s0 + $0x1b8] sm:$0xff]  ;;  %v598_v61 = vpack.c.bf16 %v421_v53, %v419_v52  ;;  %v418_v62 = vld [vmem:[%s1118_s0 + $0x2e0] sm:$0xff] }
  0x1d   :  { %533 = vmatpush1.bf16.msra.mxu0 %v532_v54  ;;  %v552_v54 = vpack.c.bf16 %v70_v45, %v68_v44  ;;  %v420_v63 = vld [vmem:[%s1118_s0 + $0x2f0] sm:$0xff]  ;;  %v423_v0 = vld [vmem:[%s1118_s0 + $0x308] sm:$0xff]  ;;  %v425_v1 = vld [vmem:[%s1118_s0 + $0x318] sm:$0xff]  ;;  %v556_v2 = vpack.c.bf16 %v74_v57, %v72_v56 }
  0x1e   :  { %535 = vmatprep.subr.bf16.mxu0 %v534_v58  ;;  %v77_v58 = vld [vmem:[%s1118_s0 + $0x1a8] sm:$0xff]  ;;  %v76_v5 = vld [vmem:[%s1118_s0 + $0x1a0] sm:$0xff]  ;;  %v600_v8 = vpack.c.bf16 %v420_v63, %v418_v62  ;;  %v83_v9 = vld [vmem:[%s1118_s0 + $0x1d8] sm:$0xff]  ;;  %v602_v10 = vpack.c.bf16 %v425_v1, %v423_v0 }
  0x1f   :  { %589 = vmatpush1.bf16.msra.mxu1 %v588_v35  ;;  %v558_v4 = vpack.c.bf16 %v79_v60, %v77_v58  ;;  %v422_v11 = vld [vmem:[%s1118_s0 + $0x300] sm:$0xff]  ;;  %v424_v12 = vld [vmem:[%s1118_s0 + $0x310] sm:$0xff]  ;;  %v427_v13 = vld [vmem:[%s1118_s0 + $0x328] sm:$0xff] }
  0x20   :  { %591 = vmatprep.subr.bf16.mxu1 %v590_v37  ;;  %v429_v14 = vld [vmem:[%s1118_s0 + $0x338] sm:$0xff]  ;;  %v85_v20 = vld [vmem:[%s1118_s0 + $0x1e8] sm:$0xff]  ;;  %v604_v21 = vpack.c.bf16 %v424_v12, %v422_v11  ;;  %v426_v24 = vld [vmem:[%s1118_s0 + $0x320] sm:$0xff] }
  0x21   :  { %537 = vmatpush1.bf16.msra.mxu0 %v536_v6  ;;  %v78_v6 = vld [vmem:[%s1118_s0 + $0x1b0] sm:$0xff]  ;;  %v87_v22 = vld [vmem:[%s1118_s0 + $0x1f8] sm:$0xff]  ;;  %v606_v23 = vpack.c.bf16 %v429_v14, %v427_v13  ;;  %v431_v26 = vld [vmem:[%s1118_s0 + $0x348] sm:$0xff] }
  0x22   :  { %539 = vmatprep.subr.bf16.mxu0 %v538_v7  ;;  %v81_v7 = vld [vmem:[%s1118_s0 + $0x1c8] sm:$0xff]  ;;  %v560_v15 = vpack.c.bf16 %v78_v6, %v76_v5  ;;  %v428_v25 = vld [vmem:[%s1118_s0 + $0x330] sm:$0xff]  ;;  %v433_v27 = vld [vmem:[%s1118_s0 + $0x358] sm:$0xff] }
  0x23   :  { %593 = vmatpush1.bf16.msra.mxu1 %v592_v47  ;;  %v562_v17 = vpack.c.bf16 %v83_v9, %v81_v7  ;;  %v86_v32 = vld [vmem:[%s1118_s0 + $0x1f0] sm:$0xff]  ;;  %v608_v33 = vpack.c.bf16 %v428_v25, %v426_v24  ;;  %v610_v34 = vpack.c.bf16 %v433_v27, %v431_v26  ;;  %v430_v35 = vld [vmem:[%s1118_s0 + $0x340] sm:$0xff]  ;;  %v435_v37 = vld [vmem:[%s1118_s0 + $0x368] sm:$0xff] }
  0x24   :  { %595 = vmatprep.subr.bf16.mxu1 %v594_v49  ;;  %v432_v36 = vld [vmem:[%s1118_s0 + $0x350] sm:$0xff]  ;;  %v437_v38 = vld [vmem:[%s1118_s0 + $0x378] sm:$0xff]  ;;  %v439_v45 = vld [vmem:[%s1118_s0 + $0x388] sm:$0xff] }
  0x25   :  { %541 = vmatpush1.bf16.msra.mxu0 %v540_v18  ;;  %v80_v18 = vld [vmem:[%s1118_s0 + $0x1c0] sm:$0xff]  ;;  %v612_v41 = vpack.c.bf16 %v432_v36, %v430_v35  ;;  %v436_v44 = vld [vmem:[%s1118_s0 + $0x370] sm:$0xff]  ;;  %v441_v46 = vld [vmem:[%s1118_s0 + $0x398] sm:$0xff] }
  0x26   :  { %543 = vmatprep.subr.bf16.mxu0 %v542_v19  ;;  %v82_v19 = vld [vmem:[%s1118_s0 + $0x1d0] sm:$0xff]  ;;  %v618_v48 = vpack.c.bf16 %v441_v46, %v439_v45  ;;  %v438_v49 = vld [vmem:[%s1118_s0 + $0x380] sm:$0xff]  ;;  %v443_v52 = vld [vmem:[%s1118_s0 + $0x3a8] sm:$0xff] }
  0x27   :  { %597 = vmatpush1.bf16.msra.mxu1 %v596_v59  ;;  %v564_v28 = vpack.c.bf16 %v82_v19, %v80_v18  ;;  %v440_v50 = vld [vmem:[%s1118_s0 + $0x390] sm:$0xff]  ;;  %v445_v53 = vld [vmem:[%s1118_s0 + $0x3b8] sm:$0xff]  ;;  %v442_v56 = vld [vmem:[%s1118_s0 + $0x3a0] sm:$0xff] }
  0x28   :  { %599 = vmatprep.subr.bf16.mxu1 %v598_v61  ;;  %v444_v57 = vld [vmem:[%s1118_s0 + $0x3b0] sm:$0xff]  ;;  %v447_v58 = vld [vmem:[%s1118_s0 + $0x3c8] sm:$0xff]  ;;  %v449_v59 = vld [vmem:[%s1118_s0 + $0x3d8] sm:$0xff] }
  0x29   :  { %545 = vmatpush1.bf16.msra.mxu0 %v544_v30  ;;  %v566_v30 = vpack.c.bf16 %v87_v22, %v85_v20  ;;  %v624_v60 = vpack.c.bf16 %v444_v57, %v442_v56  ;;  %v626_v61 = vpack.c.bf16 %v449_v59, %v447_v58  ;;  %v446_v62 = vld [vmem:[%s1118_s0 + $0x3c0] sm:$0xff]  ;;  %v448_v63 = vld [vmem:[%s1118_s0 + $0x3d0] sm:$0xff]  ;;  %v451_v0 = vld [vmem:[%s1118_s0 + $0x3e8] sm:$0xff] }
  0x2a   :  { %547 = vmatprep.subr.bf16.mxu0 %v546_v31  ;;  %v84_v31 = vld [vmem:[%s1118_s0 + $0x1e0] sm:$0xff]  ;;  %v453_v1 = vld [vmem:[%s1118_s0 + $0x3f8] sm:$0xff]  ;;  %v452_v6 = vld [vmem:[%s1118_s0 + $0x3f0] sm:$0xff] }
  0x2b   :  { %601 = vmatpush1.bf16.msra.mxu1 %v600_v8  ;;  %v568_v39 = vpack.c.bf16 %v86_v32, %v84_v31  ;;  %v450_v5 = vld [vmem:[%s1118_s0 + $0x3e0] sm:$0xff]  ;;  %v664_v8 = vmov 0.0|0.0   ;;  %v300_v11 = vld [vmem:[%s1119_s1 + $0x10] sm:$0xff]  ;;  %v301_v13 = vld [vmem:[%s1119_s1 + $0x18] sm:$0xff] }
  0x2c   :  { %603 = vmatprep.subr.bf16.mxu1 %v602_v10  ;;  %v632_v7 = vpack.c.bf16 %v452_v6, %v450_v5  ;;  %v298_v9 = vld [vmem:[%s1119_s1] sm:$0xff]  ;;  %v299_v10 = vld [vmem:[%s1119_s1 + $0x8] sm:$0xff]  ;;  %v638_v14 = vpack.c.bf16 %v301_v13, %v300_v11  ;;  %v304_v18 = vld [vmem:[%s1119_s1 + $0x30] sm:$0xff] }
  0x2d   :  { %549 = vmatpush1.bf16.msra.mxu0 %v548_v42  ;;  %v614_v42 = vpack.c.bf16 %v437_v38, %v435_v37  ;;  %v635_v12 = vpack.c.bf16 %v299_v10, %v298_v9  ;;  %v303_v16 = vld [vmem:[%s1119_s1 + $0x28] sm:$0xff]  ;;  %v305_v19 = vld [vmem:[%s1119_s1 + $0x38] sm:$0xff]  ;;  %v308_v24 = vld [vmem:[%s1119_s1 + $0x50] sm:$0xff] }
  0x2e   :  { %551 = vmatprep.subr.bf16.mxu0 %v550_v43  ;;  %v434_v43 = vld [vmem:[%s1118_s0 + $0x360] sm:$0xff]  ;;  %v644_v20 = vpack.c.bf16 %v305_v19, %v304_v18  ;;  %v307_v22 = vld [vmem:[%s1119_s1 + $0x48] sm:$0xff]  ;;  %v309_v25 = vld [vmem:[%s1119_s1 + $0x58] sm:$0xff] }
  0x2f   :  { %605 = vmatpush1.bf16.msra.mxu1 %v604_v21  ;;  %v616_v47 = vpack.c.bf16 %v436_v44, %v434_v43  ;;  %v306_v21 = vld [vmem:[%s1119_s1 + $0x40] sm:$0xff]  ;;  %v650_v26 = vpack.c.bf16 %v309_v25, %v308_v24  ;;  %v312_v32 = vld [vmem:[%s1119_s1 + $0x70] sm:$0xff] }
  0x30   :  { %607 = vmatprep.subr.bf16.mxu1 %v606_v23  ;;  %v647_v23 = vpack.c.bf16 %v307_v22, %v306_v21  ;;  %v310_v27 = vld [vmem:[%s1119_s1 + $0x60] sm:$0xff] }
  0x31   :  { %553 = vmatpush1.bf16.msra.mxu0 %v552_v54  ;;  %v620_v54 = vpack.c.bf16 %v440_v50, %v438_v49 }
  0x32   :  { %555 = vmatprep.subr.bf16.mxu0 %v554_v55  ;;  %v622_v55 = vpack.c.bf16 %v445_v53, %v443_v52 }
  0x33   :  { %609 = vmatpush1.bf16.msra.mxu1 %v608_v33  ;;  %v313_v33 = vld [vmem:[%s1119_s1 + $0x78] sm:$0xff] }
  0x34   :  { %611 = vmatprep.subr.bf16.mxu1 %v610_v34  ;;  %v656_v34 = vpack.c.bf16 %v313_v33, %v312_v32 }
  0x35   :  { %557 = vmatpush1.bf16.msra.mxu0 %v556_v2  ;;  %v628_v2 = vpack.c.bf16 %v448_v63, %v446_v62 }
  0x36   :  { %559 = vmatprep.subr.bf16.mxu0 %v558_v4  ;;  %v630_v4 = vpack.c.bf16 %v453_v1, %v451_v0 }
  0x37   :  { %613 = vmatpush1.bf16.msra.mxu1 %v612_v41 }
  0x38   :  { %615 = vmatprep.subr.bf16.mxu1 %v614_v42 }
  0x39   :  { %561 = vmatpush1.bf16.msra.mxu0 %v560_v15  ;;  %v302_v15 = vld [vmem:[%s1119_s1 + $0x20] sm:$0xff] }
  0x3a   :  { %563 = vmatprep.subr.bf16.mxu0 %v562_v17  ;;  %v641_v17 = vpack.c.bf16 %v303_v16, %v302_v15 }
  0x3b   :  { %617 = vmatpush1.bf16.msra.mxu1 %v616_v47 }
  0x3c   :  { %619 = vmatprep.subr.bf16.mxu1 %v618_v48 }
  0x3d   :  { %565 = vmatpush1.bf16.msra.mxu0 %v564_v28  ;;  %v311_v28 = vld [vmem:[%s1119_s1 + $0x68] sm:$0xff] }
  0x3e   :  { %567 = vmatprep.subr.bf16.mxu0 %v566_v30  ;;  %v653_v29 = vpack.c.bf16 %v311_v28, %v310_v27 }
  0x3f   :  { %621 = vmatpush1.bf16.msra.mxu1 %v620_v54 }
  0x40   :  { %623 = vmatprep.subr.bf16.mxu1 %v622_v55 }
  0x41   :  { %569 = vmatpush1.bf16.msra.mxu0 %v568_v39 }
  0x42   :  { %634 = vmatprep.subr.bf16.mxu0 %v664_v8 }
  0x43   :  { %625 = vmatpush1.bf16.msra.mxu1 %v624_v60 }
  0x44   :  { %389 = vmatmul.mubr.msk.f32.vlgmr.msra.gmra.mrb[0].mxu0 %vm18_vm0, %v663_v51  ;;  %627 = vmatprep.subr.bf16.mxu1 %v626_v61 }
  0x45   :  { %636 = vmatpush3.bf16.msra.mxu0 %v635_v12  ;;  %503 = vmatprep.mubr.msk.f32.mxu0 %vm665_vm1, %v662_v3 }
  0x46   :  { %637 = vmatprep.subr.bf16.mxu0 %v664_v8 }
  0x47   :  { %629 = vmatpush1.bf16.msra.mxu1 %v628_v2 }
  0x48   :  { %631 = vmatprep.subr.bf16.mxu1 %v630_v4 }
  0x49   :  { %639 = vmatpush3.bf16.msra.mxu0 %v638_v14 }
  0x4a   :  { %640 = vmatprep.subr.bf16.mxu0 %v664_v8 }
  0x4b   :  { %633 = vmatpush1.bf16.msra.mxu1 %v632_v7 }
  0x4d   :  { %642 = vmatpush3.bf16.msra.mxu0 %v641_v17 }
  0x4e   :  { %643 = vmatprep.subr.bf16.mxu0 %v664_v8 }
  0x51   :  { %645 = vmatpush3.bf16.msra.mxu0 %v644_v20 }
  0x52   :  { %646 = vmatprep.subr.bf16.mxu0 %v664_v8 }
  0x55   :  { %648 = vmatpush3.bf16.msra.mxu0 %v647_v23 }
  0x56   :  { %649 = vmatprep.subr.bf16.mxu0 %v664_v8 }
  0x59   :  { %651 = vmatpush3.bf16.msra.mxu0 %v650_v26 }
  0x5a   :  { %652 = vmatprep.subr.bf16.mxu0 %v664_v8 }
  0x5d   :  { %654 = vmatpush3.bf16.msra.mxu0 %v653_v29 }
  0x5e   :  { %655 = vmatprep.subr.bf16.mxu0 %v664_v8 }
  0x61   :  { %657 = vmatpush3.bf16.msra.mxu0 %v656_v34 }
 0x117   :  { %v154_v30 = vpop.f32.mrb[0].mxu0 }
 0x118   :  { %v156_v31 = vpop.f32.mrb[1].mxu0 }
 0x119   :  { %288 = vmatprep.mubr.f32.mxu1 %v156_v31 }
 0x11a   :  { %289 = vmatmul.mubr.f32.vlgmr.msra.gmra.mrb[0].mxu1 %v154_v30 }
 0x1ed   :  { %v290_v35 = vpop.f32.mrb[0].mxu1 }
 0x1ee   :  { %v295_v36 = vmul.f32 %v290_v35, %v290_v35  ;;  %v292_v37 = vpop.f32.mrb[1].mxu1 }
 0x1ef   :  { %v296_v38 = vmul.f32 %v292_v37, %v292_v37 }
 0x1f1   :  { %v297_v39 = vadd.f32 %v296_v38, %v295_v36 }
 0x1f3   :  { %504 = vmatmul.mubr.f32.vlgmr.msra.gmra.mrb[2].mxu0 %v297_v39 }
 0x2c6   :  { %v380_v40 = vpop.f32.mrb[2].mxu0 }
 0x2c7   :  { %384 = vst [vmem:[%s1120_s2] sm:$0x1] %v380_v40  ;;  %v505_v41 = vpop.f32.mrb[3].mxu0 }

</bundles_post_ra>
